<compile_context>
chip_gen: v7x
topology: tpu7x:2x2x1
jax: 0.10.0
libtpu: 0.0.40
codegen_flags: <defaults>
</compile_context>

<pallas_src>
import functools

import jax
import jax.numpy as jnp
from jax.experimental import pallas as pl
from jax.experimental.pallas import tpu as pltpu


# --------------------------------------------------------------------------
# Pallas kernels:  out(C, tm) = act( W(C,K) @ P(K,tm) + b [+ res | + Ws@Xs+bs] )
# --------------------------------------------------------------------------
def _make_fused_kernel(mode, relu):
    """mode in {"plain", "residual", "project"}."""

    def _finish(acc, o_ref):
        if relu:
            acc = jnp.maximum(acc, 0.0)
        o_ref[...] = acc.astype(o_ref.dtype)

    if mode == "plain":
        def kernel(w_ref, p_ref, b_ref, o_ref):
            acc = jnp.dot(w_ref[...], p_ref[...],
                          preferred_element_type=jnp.float32)
            _finish(acc + b_ref[...], o_ref)
    elif mode == "residual":
        def kernel(w_ref, p_ref, b_ref, r_ref, o_ref):
            acc = jnp.dot(w_ref[...], p_ref[...],
                          preferred_element_type=jnp.float32)
            _finish(acc + b_ref[...] + r_ref[...].astype(jnp.float32), o_ref)
    elif mode == "project":
        def kernel(w_ref, p_ref, b_ref, ws_ref, xs_ref, bs_ref, o_ref):
            acc = jnp.dot(w_ref[...], p_ref[...],
                          preferred_element_type=jnp.float32)
            sc = jnp.dot(ws_ref[...], xs_ref[...],
                         preferred_element_type=jnp.float32)
            _finish(acc + b_ref[...] + sc + bs_ref[...], o_ref)
    else:
        raise ValueError(mode)
    return kernel


def _nbytes(a):
    return int(a.size) * jnp.dtype(a.dtype).itemsize


def _pick_tm(mp, tm_max=1024):
    # Largest 128-multiple divisor of mp (<= tm_max), preferring >= 2 grid
    # blocks so v7x's two TensorCores both get work.
    divisors = [t for t in range(128, min(tm_max, mp) + 1, 128) if mp % t == 0]
    multi = [t for t in divisors if mp // t >= 2]
    return max(multi) if multi else max(divisors)


def fused_conv_matmul(w_fold_T, patches_T, bias_col, *, relu, out_dtype,
                      residual_T=None, shortcut=None):
    """out(C, M) = act(w_fold_T @ patches_T + bias [+ residual | + shortcut])."""
    C, K = w_fold_T.shape
    Kp, M = patches_T.shape
    assert K == Kp
    Mp = pl.cdiv(M, 128) * 128
    pad = Mp - M

    def pad_m(a):
        return jnp.pad(a, ((0, 0), (0, pad))) if pad else a

    patches_T = pad_m(patches_T)
    if residual_T is not None:
        residual_T = pad_m(residual_T)
    if shortcut is not None:
        ws_fold_T, xs_T, bias_s_col = shortcut
        xs_T = pad_m(xs_T)

    tm = _pick_tm(Mp)
    grid = (Mp // tm,)

    in_specs = [
        pl.BlockSpec((C, K), lambda i: (0, 0)),    # folded weight (resident)
        pl.BlockSpec((K, tm), lambda i: (0, i)),   # patches tile (lane-dense)
        pl.BlockSpec((C, 1), lambda i: (0, 0)),    # bias column
    ]
    args = [w_fold_T, patches_T, bias_col]
    flops = 2 * C * K * Mp
    bytes_accessed = (_nbytes(w_fold_T) + _nbytes(patches_T) + _nbytes(bias_col)
                      + C * Mp * jnp.dtype(out_dtype).itemsize)

    if residual_T is not None:
        mode = "residual"
        in_specs.append(pl.BlockSpec((C, tm), lambda i: (0, i)))
        args.append(residual_T)
        bytes_accessed += _nbytes(residual_T)
    elif shortcut is not None:
        mode = "project"
        Cin = ws_fold_T.shape[1]
        in_specs += [
            pl.BlockSpec((C, Cin), lambda i: (0, 0)),   # folded 1x1 weight
            pl.BlockSpec((Cin, tm), lambda i: (0, i)),  # strided input tile
            pl.BlockSpec((C, 1), lambda i: (0, 0)),     # shortcut bias
        ]
        args += [ws_fold_T, xs_T, bias_s_col]
        flops += 2 * C * Cin * Mp
        bytes_accessed += _nbytes(ws_fold_T) + _nbytes(xs_T) + _nbytes(bias_s_col)
    else:
        mode = "plain"

    out = pl.pallas_call(
        _make_fused_kernel(mode, relu),
        out_shape=jax.ShapeDtypeStruct((C, Mp), out_dtype),
        grid=grid,
        in_specs=in_specs,
        out_specs=pl.BlockSpec((C, tm), lambda i: (0, i)),
        compiler_params=pltpu.CompilerParams(
            dimension_semantics=("parallel",),
            vmem_limit_bytes=32 * 1024 * 1024),
        cost_estimate=pl.CostEstimate(
            flops=flops, transcendentals=0, bytes_accessed=bytes_accessed),
    )(*args)
    return out[:, :M] if pad else out


# --------------------------------------------------------------------------
# Glue: transposed im2col (channel-major), BN folding, weight reshaping
# --------------------------------------------------------------------------
def im2col_3x3_cnhw(x_cnhw, stride):
    """3x3, padding=1 patches of a (C, N, H, W) tensor.

    Returns (9*C, N*Ho*Wo) with K ordered (kh, kw, cin) and columns ordered
    (n, ho, wo) -- already in the transposed lane-dense layout the kernel wants.
    """
    C, N, H, W = x_cnhw.shape
    xp = jnp.pad(x_cnhw, ((0, 0), (0, 0), (1, 1), (1, 1)))
    Ho = (H + 2 - 3) // stride + 1
    Wo = (W + 2 - 3) // stride + 1
    rows = []
    for dh in range(3):
        for dw in range(3):
            sl = xp[:, :, dh:dh + stride * (Ho - 1) + 1:stride,
                    dw:dw + stride * (Wo - 1) + 1:stride]
            rows.append(sl.reshape(C, N * Ho * Wo))
    return jnp.concatenate(rows, axis=0), (N, Ho, Wo)


def fold_bn(gamma, beta, mean, var, eps=1e-5):
    scale = gamma / jnp.sqrt(var + eps)
    bias = beta - mean * scale
    return scale, bias


def w3x3_to_matrix_T(w_oihw):
    # (Cout, Cin, 3, 3) -> (Cout, 3, 3, Cin) -> (Cout, 9*Cin); K order (kh,kw,cin).
    cout, cin = w_oihw.shape[:2]
    return jnp.transpose(w_oihw, (0, 2, 3, 1)).reshape(cout, 9 * cin)


def residual_block_forward(x_nchw, params, stride):
    """Forward pass of ResidualBlock.  Input/output NCHW (PyTorch convention)."""
    in_ch = x_nchw.shape[1]
    out_ch = params["w1"].shape[0]
    # Channel-major (C, N, H, W) layout so the big N*H*W axis lands on lanes.
    x_c = jnp.transpose(x_nchw, (1, 0, 2, 3))

    # ---- conv1 (3x3, stride) + BN1 + ReLU -----------------------------------
    s1, b1 = fold_bn(params["bn1_g"], params["bn1_b"],
                     params["bn1_m"], params["bn1_v"])
    w1f = (w3x3_to_matrix_T(params["w1"]) * s1[:, None]).astype(jnp.bfloat16)
    p1, (N, Ho, Wo) = im2col_3x3_cnhw(x_c.astype(jnp.bfloat16), stride)
    y1 = fused_conv_matmul(w1f, p1, b1.reshape(out_ch, 1).astype(jnp.float32),
                           relu=True, out_dtype=jnp.bfloat16)
    y1_c = y1.reshape(out_ch, N, Ho, Wo)          # bf16 intermediate

    # ---- conv2 (3x3, stride 1) + BN2, shortcut fused, + ReLU ----------------
    s2, b2 = fold_bn(params["bn2_g"], params["bn2_b"],
                     params["bn2_m"], params["bn2_v"])
    w2f = (w3x3_to_matrix_T(params["w2"]) * s2[:, None]).astype(jnp.bfloat16)
    p2, _ = im2col_3x3_cnhw(y1_c, 1)
    b2col = b2.reshape(out_ch, 1).astype(jnp.float32)

    if stride != 1 or in_ch != out_ch:
        ss, bs = fold_bn(params["bns_g"], params["bns_b"],
                         params["bns_m"], params["bns_v"])
        wsf = (params["ws"].reshape(out_ch, in_ch) * ss[:, None]).astype(jnp.bfloat16)
        xs = x_c[:, :, ::stride, ::stride].reshape(in_ch, -1).astype(jnp.bfloat16)
        y2 = fused_conv_matmul(
            w2f, p2, b2col, relu=True, out_dtype=jnp.float32,
            shortcut=(wsf, xs, bs.reshape(out_ch, 1).astype(jnp.float32)))
    else:
        r = x_c.reshape(in_ch, -1).astype(jnp.bfloat16)
        y2 = fused_conv_matmul(w2f, p2, b2col, relu=True,
                               out_dtype=jnp.float32, residual_T=r)

    return jnp.transpose(y2.reshape(out_ch, N, Ho, Wo), (1, 0, 2, 3))  # -> NCHW


# --------------------------------------------------------------------------
# Deterministic parameter initialization (synthetic, no checkpoint)
# --------------------------------------------------------------------------
def init_params(key, in_ch, out_ch, stride):
    ks = jax.random.split(key, 8)
    p = {
        "w1": 0.1 * jax.random.normal(ks[0], (out_ch, in_ch, 3, 3), jnp.float32),
        "w2": 0.1 * jax.random.normal(ks[1], (out_ch, out_ch, 3, 3), jnp.float32),
        "bn1_g": 1.0 + 0.1 * jax.random.normal(ks[2], (out_ch,), jnp.float32),
        "bn1_b": 0.1 * jax.random.normal(ks[3], (out_ch,), jnp.float32),
        "bn1_m": 0.05 * jnp.arange(out_ch, dtype=jnp.float32),
        "bn1_v": 1.0 + 0.02 * jnp.arange(out_ch, dtype=jnp.float32),
        "bn2_g": 1.0 + 0.1 * jax.random.normal(ks[4], (out_ch,), jnp.float32),
        "bn2_b": 0.1 * jax.random.normal(ks[5], (out_ch,), jnp.float32),
        "bn2_m": -0.03 * jnp.arange(out_ch, dtype=jnp.float32),
        "bn2_v": 1.0 + 0.01 * jnp.arange(out_ch, dtype=jnp.float32),
    }
    if stride != 1 or in_ch != out_ch:
        p["ws"] = 0.1 * jax.random.normal(ks[6], (out_ch, in_ch, 1, 1), jnp.float32)
        p["bns_g"] = 1.0 + 0.1 * jax.random.normal(ks[7], (out_ch,), jnp.float32)
        p["bns_b"] = jnp.full((out_ch,), 0.02, jnp.float32)
        p["bns_m"] = jnp.full((out_ch,), 0.01, jnp.float32)
        p["bns_v"] = jnp.full((out_ch,), 1.1, jnp.float32)
    return p


# --------------------------------------------------------------------------
# Pure-JAX f32 reference (lax convolutions) for correctness checking
# --------------------------------------------------------------------------
def _conv_ref(x_nhwc, w_oihw, stride, pad):
    return jax.lax.conv_general_dilated(
        x_nhwc, jnp.transpose(w_oihw, (2, 3, 1, 0)),
        window_strides=(stride, stride),
        padding=[(pad, pad), (pad, pad)],
        dimension_numbers=("NHWC", "HWIO", "NHWC"))


def _bn_ref(y, g, b, m, v, eps=1e-5):
    return (y - m) / jnp.sqrt(v + eps) * g + b


def residual_block_ref(x_nchw, params, stride):
    in_ch = x_nchw.shape[1]
    out_ch = params["w1"].shape[0]
    x = jnp.transpose(x_nchw, (0, 2, 3, 1))
    y1 = jax.nn.relu(_bn_ref(_conv_ref(x, params["w1"], stride, 1),
                             params["bn1_g"], params["bn1_b"],
                             params["bn1_m"], params["bn1_v"]))
    y2 = _bn_ref(_conv_ref(y1, params["w2"], 1, 1),
                 params["bn2_g"], params["bn2_b"],
                 params["bn2_m"], params["bn2_v"])
    if stride != 1 or in_ch != out_ch:
        sc = _bn_ref(_conv_ref(x, params["ws"], stride, 0),
                     params["bns_g"], params["bns_b"],
                     params["bns_m"], params["bns_v"])
    else:
        sc = x
    out = jax.nn.relu(y2 + sc)
    return jnp.transpose(out, (0, 3, 1, 2))


# --------------------------------------------------------------------------
if __name__ == "__main__":
    key = jax.random.PRNGKey(0)
    k_x, k_p, k_x2, k_p2 = jax.random.split(key, 4)

    # Config 1: projection shortcut (stride 2, channel expansion).
    N, IN_CH, OUT_CH, H, W, STRIDE = 2, 4, 8, 16, 16, 2
    x = jax.random.normal(k_x, (N, IN_CH, H, W), jnp.float32)   # NCHW like PyTorch
    params = init_params(k_p, IN_CH, OUT_CH, STRIDE)
    fwd = jax.jit(functools.partial(residual_block_forward, stride=STRIDE))
    out = jax.block_until_ready(fwd(x, params))
    ref = residual_block_ref(x, params, STRIDE)
    assert out.shape == (N, OUT_CH, H // STRIDE, W // STRIDE), out.shape
    # bf16 operands with f32 accumulation -> loosened tolerance vs f32 reference.
    err = float(jnp.max(jnp.abs(out - ref)))
    assert jnp.allclose(out, ref, rtol=5e-2, atol=5e-2), err

    # Config 2: identity shortcut (stride 1, same channels).
    N2, CH2, H2, W2 = 2, 8, 16, 16
    x2 = jax.random.normal(k_x2, (N2, CH2, H2, W2), jnp.float32)
    params2 = init_params(k_p2, CH2, CH2, 1)
    fwd2 = jax.jit(functools.partial(residual_block_forward, stride=1))
    out2 = jax.block_until_ready(fwd2(x2, params2))
    ref2 = residual_block_ref(x2, params2, 1)
    assert out2.shape == (N2, CH2, H2, W2), out2.shape
    err2 = float(jnp.max(jnp.abs(out2 - ref2)))
    assert jnp.allclose(out2, ref2, rtol=5e-2, atol=5e-2), err2

    print("KERNEL_OK")
</pallas_src>

<mosaic_0001>
module attributes {stable_mosaic.version = 11 : i64} {
  func.func @kernel(%arg0: i32, %arg1: memref<8x36xbf16, #tpu.memory_space<vmem>>, %arg2: memref<36x128xbf16, #tpu.memory_space<vmem>>, %arg3: memref<8x1xf32, #tpu.memory_space<vmem>>, %arg4: memref<8x128xbf16, #tpu.memory_space<vmem>>) attributes {dimension_semantics = [#tpu.dimension_semantics<parallel>], iteration_bounds = array<i64: 1>, scalar_prefetch = 0 : i64, scratch_operands = 0 : i64, tpu.core_type = #tpu.core_type<tc>, window_params = [{pipeline_mode = #tpu.pipeline_mode<synchronous>, transform_indices = @transform_0, window_bounds = array<i64: 8, 36>}, {transform_indices = @transform_1, window_bounds = array<i64: 36, 128>}, {pipeline_mode = #tpu.pipeline_mode<synchronous>, transform_indices = @transform_2, window_bounds = array<i64: 8, 1>}, {transform_indices = @transform_3, window_bounds = array<i64: 8, 128>}]} {
    %c0 = arith.constant 0 : index
    %c0_0 = arith.constant 0 : index
    %0 = vector.load %arg1[%c0, %c0_0] : memref<8x36xbf16, #tpu.memory_space<vmem>>, vector<8x36xbf16>
    %c0_1 = arith.constant 0 : index
    %c0_2 = arith.constant 0 : index
    %1 = vector.load %arg2[%c0_1, %c0_2] : memref<36x128xbf16, #tpu.memory_space<vmem>>, vector<36x128xbf16>
    %cst = arith.constant dense<0.000000e+00> : vector<8x128xf32>
    %2 = tpu.matmul %0, %1, %cst {dimension_numbers = #tpu.dot_dimension_numbers<[1], [0], [0], [1], [0, 0, 1, 1], [], []>} : vector<8x36xbf16>, vector<36x128xbf16>, vector<8x128xf32> -> vector<8x128xf32>
    %c0_3 = arith.constant 0 : index
    %c0_4 = arith.constant 0 : index
    %3 = vector.load %arg3[%c0_3, %c0_4] : memref<8x1xf32, #tpu.memory_space<vmem>>, vector<8x1xf32>
    %4 = vector.broadcast %3 : vector<8x1xf32> to vector<8x128xf32>
    %5 = arith.addf %2, %4 : vector<8x128xf32>
    %cst_5 = arith.constant 0.000000e+00 : f32
    %6 = vector.broadcast %cst_5 : f32 to vector<8x128xf32>
    %7 = arith.maximumf %5, %6 : vector<8x128xf32>
    %8 = arith.truncf %7 : vector<8x128xf32> to vector<8x128xbf16>
    %c0_6 = arith.constant 0 : index
    %c0_7 = arith.constant 0 : index
    %9 = vector.load %arg4[%c0_6, %c0_7] : memref<8x128xbf16, #tpu.memory_space<vmem>>, vector<8x128xbf16>
    tpu.vector_store %arg4[%c0_6, %c0_7], %8 {strides = array<i32>} : memref<8x128xbf16, #tpu.memory_space<vmem>>, vector<8x128xbf16>,
    return
  }
  func.func @transform_0(%arg0: i32) -> (i32, i32) {
    %c0_i32 = arith.constant 0 : i32
    %c0_i32_0 = arith.constant 0 : i32
    %c0_i32_1 = arith.constant 0 : i32
    return %c0_i32, %c0_i32_0 : i32, i32
  }
  func.func @transform_1(%arg0: i32) -> (i32, i32) {
    %c0_i32 = arith.constant 0 : i32
    %c0_i32_0 = arith.constant 0 : i32
    return %c0_i32, %arg0 : i32, i32
  }
  func.func @transform_2(%arg0: i32) -> (i32, i32) {
    %c0_i32 = arith.constant 0 : i32
    %c0_i32_0 = arith.constant 0 : i32
    %c0_i32_1 = arith.constant 0 : i32
    return %c0_i32, %c0_i32_0 : i32, i32
  }
  func.func @transform_3(%arg0: i32) -> (i32, i32) {
    %c0_i32 = arith.constant 0 : i32
    %c0_i32_0 = arith.constant 0 : i32
    return %c0_i32, %arg0 : i32, i32
  }
}

module attributes {stable_mosaic.version = 11 : i64} {
  func.func @kernel(%arg0: i32, %arg1: memref<8x72xbf16, #tpu.memory_space<vmem>>, %arg2: memref<72x128xbf16, #tpu.memory_space<vmem>>, %arg3: memref<8x1xf32, #tpu.memory_space<vmem>>, %arg4: memref<8x4xbf16, #tpu.memory_space<vmem>>, %arg5: memref<4x128xbf16, #tpu.memory_space<vmem>>, %arg6: memref<8x1xf32, #tpu.memory_space<vmem>>, %arg7: memref<8x128xf32, #tpu.memory_space<vmem>>) attributes {dimension_semantics = [#tpu.dimension_semantics<parallel>], iteration_bounds = array<i64: 1>, scalar_prefetch = 0 : i64, scratch_operands = 0 : i64, tpu.core_type = #tpu.core_type<tc>, window_params = [{pipeline_mode = #tpu.pipeline_mode<synchronous>, transform_indices = @transform_0, window_bounds = array<i64: 8, 72>}, {transform_indices = @transform_1, window_bounds = array<i64: 72, 128>}, {pipeline_mode = #tpu.pipeline_mode<synchronous>, transform_indices = @transform_2, window_bounds = array<i64: 8, 1>}, {pipeline_mode = #tpu.pipeline_mode<synchronous>, transform_indices = @transform_3, window_bounds = array<i64: 8, 4>}, {transform_indices = @transform_4, window_bounds = array<i64: 4, 128>}, {pipeline_mode = #tpu.pipeline_mode<synchronous>, transform_indices = @transform_5, window_bounds = array<i64: 8, 1>}, {transform_indices = @transform_6, window_bounds = array<i64: 8, 128>}]} {
    %c0 = arith.constant 0 : index
    %c0_0 = arith.constant 0 : index
    %0 = vector.load %arg1[%c0, %c0_0] : memref<8x72xbf16, #tpu.memory_space<vmem>>, vector<8x72xbf16>
    %c0_1 = arith.constant 0 : index
    %c0_2 = arith.constant 0 : index
    %1 = vector.load %arg2[%c0_1, %c0_2] : memref<72x128xbf16, #tpu.memory_space<vmem>>, vector<72x128xbf16>
    %cst = arith.constant dense<0.000000e+00> : vector<8x128xf32>
    %2 = tpu.matmul %0, %1, %cst {dimension_numbers = #tpu.dot_dimension_numbers<[1], [0], [0], [1], [0, 0, 1, 1], [], []>} : vector<8x72xbf16>, vector<72x128xbf16>, vector<8x128xf32> -> vector<8x128xf32>
    %c0_3 = arith.constant 0 : index
    %c0_4 = arith.constant 0 : index
    %3 = vector.load %arg4[%c0_3, %c0_4] : memref<8x4xbf16, #tpu.memory_space<vmem>>, vector<8x4xbf16>
    %c0_5 = arith.constant 0 : index
    %c0_6 = arith.constant 0 : index
    %4 = vector.load %arg5[%c0_5, %c0_6] : memref<4x128xbf16, #tpu.memory_space<vmem>>, vector<4x128xbf16>
    %cst_7 = arith.constant dense<0.000000e+00> : vector<8x128xf32>
    %5 = tpu.matmul %3, %4, %cst_7 {dimension_numbers = #tpu.dot_dimension_numbers<[1], [0], [0], [1], [0, 0, 1, 1], [], []>} : vector<8x4xbf16>, vector<4x128xbf16>, vector<8x128xf32> -> vector<8x128xf32>
    %c0_8 = arith.constant 0 : index
    %c0_9 = arith.constant 0 : index
    %6 = vector.load %arg3[%c0_8, %c0_9] : memref<8x1xf32, #tpu.memory_space<vmem>>, vector<8x1xf32>
    %7 = vector.broadcast %6 : vector<8x1xf32> to vector<8x128xf32>
    %8 = arith.addf %2, %7 : vector<8x128xf32>
    %9 = arith.addf %8, %5 : vector<8x128xf32>
    %c0_10 = arith.constant 0 : index
    %c0_11 = arith.constant 0 : index
    %10 = vector.load %arg6[%c0_10, %c0_11] : memref<8x1xf32, #tpu.memory_space<vmem>>, vector<8x1xf32>
    %11 = vector.broadcast %10 : vector<8x1xf32> to vector<8x128xf32>
    %12 = arith.addf %9, %11 : vector<8x128xf32>
    %cst_12 = arith.constant 0.000000e+00 : f32
    %13 = vector.broadcast %cst_12 : f32 to vector<8x128xf32>
    %14 = arith.maximumf %12, %13 : vector<8x128xf32>
    %c0_13 = arith.constant 0 : index
    %c0_14 = arith.constant 0 : index
    %15 = vector.load %arg7[%c0_13, %c0_14] : memref<8x128xf32, #tpu.memory_space<vmem>>, vector<8x128xf32>
    tpu.vector_store %arg7[%c0_13, %c0_14], %14 {strides = array<i32>} : memref<8x128xf32, #tpu.memory_space<vmem>>, vector<8x128xf32>,
    return
  }
  func.func @transform_0(%arg0: i32) -> (i32, i32) {
    %c0_i32 = arith.constant 0 : i32
    %c0_i32_0 = arith.constant 0 : i32
    %c0_i32_1 = arith.constant 0 : i32
    return %c0_i32, %c0_i32_0 : i32, i32
  }
  func.func @transform_1(%arg0: i32) -> (i32, i32) {
    %c0_i32 = arith.constant 0 : i32
    %c0_i32_0 = arith.constant 0 : i32
    return %c0_i32, %arg0 : i32, i32
  }
  func.func @transform_2(%arg0: i32) -> (i32, i32) {
    %c0_i32 = arith.constant 0 : i32
    %c0_i32_0 = arith.constant 0 : i32
    %c0_i32_1 = arith.constant 0 : i32
    return %c0_i32, %c0_i32_0 : i32, i32
  }
  func.func @transform_3(%arg0: i32) -> (i32, i32) {
    %c0_i32 = arith.constant 0 : i32
    %c0_i32_0 = arith.constant 0 : i32
    %c0_i32_1 = arith.constant 0 : i32
    return %c0_i32, %c0_i32_0 : i32, i32
  }
  func.func @transform_4(%arg0: i32) -> (i32, i32) {
    %c0_i32 = arith.constant 0 : i32
    %c0_i32_0 = arith.constant 0 : i32
    return %c0_i32, %arg0 : i32, i32
  }
  func.func @transform_5(%arg0: i32) -> (i32, i32) {
    %c0_i32 = arith.constant 0 : i32
    %c0_i32_0 = arith.constant 0 : i32
    %c0_i32_1 = arith.constant 0 : i32
    return %c0_i32, %c0_i32_0 : i32, i32
  }
  func.func @transform_6(%arg0: i32) -> (i32, i32) {
    %c0_i32 = arith.constant 0 : i32
    %c0_i32_0 = arith.constant 0 : i32
    return %c0_i32, %arg0 : i32, i32
  }
}

</mosaic_0001>

<bundles_post_ra>
// kernel: residual_block_forward.2
= control target key start
LH: loop header
LB: loop body
LE: loop exit
PB: predicated region body
PF: predicated region fallthrough
CT: control target
= control target key end

     0   :  { %v122_v0 = vmov 0.0   ;;  %vm123_vm0 = vmmov 0   ;;  %v124_v2 = vmov 0   ;;  %vm46_vm1 = vcmask 1041408   ;;  %s163_s1 = inlined_call_operand.vmem [shape: bf16[36,128], index: 1, kind: input, shape index: {}]   ;;  %s164_s2 = inlined_call_operand.vmem [shape: f32[8,1], index: 2, kind: input, shape index: {}]   ;;  %s165_s0 = inlined_call_operand.vmem [shape: bf16[8,36], index: 0, kind: input, shape index: {}]   ;;  %s166_s3 = inlined_call_operand.vmem [shape: bf16[8,128], index: 3, kind: output, shape index: {}]  }
   0x1   :  { %105 = vmatprep.subr.bf16.mxu0 %v122_v0  ;;  %v119_v1 = vld [vmem:[%s163_s1] sm:$0xff]   ;;  %111 = vmatprep.mubr.msk.bf16.mxu0 %vm123_vm0, %v122_v0  ;;  %v120_v3 = vld [vmem:[%s163_s1 + $0x8] sm:$0xff]   ;;  %v121_v5 = vld [vmem:[%s163_s1 + $0x10] ss:$0 sps:$4 sm:$0x33]   ;;  %vm42_vm2 = vcmask 293888  }
   0x2   :  { %118 = vset.pattern.permute.xlu0 %v124_v2  ;;  %106 = vmatpush3.bf16.msra.mxu0 %v119_v1  ;;  %v21_v4 = vld [vmem:[%s164_s2] sm:$0xff]  ;;  %v48_v6 = vsel %vm46_vm1, %v121_v5, 0 }
   0x3   :  { %107 = vmatprep.subr.bf16.mxu0 %v122_v0  ;;  %24 = vperm.xlu0 %118, %v21_v4   ;;  %v15_v7 = vld [vmem:[%s165_s0] sm:$0xf] }
   0x6   :  { %108 = vmatpush3.bf16.msra.mxu0 %v120_v3 }
   0x7   :  { %109 = vmatprep.subr.bf16.mxu0 %v122_v0 }
   0xa   :  { %110 = vmatpush3.bf16.msra.mxu0 %v48_v6 }
   0xd   :  { %112 = vmatmul.mubr.msk.bf16.vlgmr.msra.gmra.mrb[0].mxu0 %vm42_vm2, %v15_v7 }
  0x82   :  { %v25_v8 = vpop.permute.xlu0 %24 }
  0xe0   :  { %v84_v9 = vpop.f32.mrb[0].mxu0 }
  0xe1   :  { %v85_v10 = vadd.f32 %v84_v9, %v25_v8  ;;  %v113_v11 = vpop.f32.mrb[1].mxu0 }
  0xe2   :  { %v87_v12 = vpop.f32.mrb[2].mxu0 }
  0xe3   :  { %v90_v13 = vmax.f32 %v85_v10, 0.0  ;;  %v114_v14 = vpop.f32.mrb[3].mxu0 }
  0xe5   :  { %v91_v15 = vpack.c.bf16 %v90_v13, %v90_v13 }
  0xe7   :  { %92 = vst [vmem:[%s166_s3] sm:$0xf] %v91_v15 }

// kernel: residual_block_forward.3
= control target key start
LH: loop header
LB: loop body
LE: loop exit
PB: predicated region body
PF: predicated region fallthrough
CT: control target
= control target key end

     0   :  { %v223_v0 = vmov 0.0   ;;  %vm40_vm0 = vcmask 1041408   ;;  %vm224_vm1 = vmmov 0   ;;  %v225_v3 = vmov 0   ;;  %s294_s1 = inlined_call_operand.vmem [shape: bf16[72,128], index: 1, kind: input, shape index: {}]   ;;  %s295_s4 = inlined_call_operand.vmem [shape: bf16[4,128], index: 4, kind: input, shape index: {}]   ;;  %s296_s2 = inlined_call_operand.vmem [shape: f32[8,1], index: 2, kind: input, shape index: {}]   ;;  %s297_s3 = inlined_call_operand.vmem [shape: bf16[8,4], index: 3, kind: input, shape index: {}]   ;;  %s298_s5 = inlined_call_operand.vmem [shape: f32[8,1], index: 5, kind: input, shape index: {}]   ;;  %s299_s0 = inlined_call_operand.vmem [shape: bf16[8,72], index: 0, kind: input, shape index: {}]   ;;  %s300_s6 = inlined_call_operand.vmem [shape: f32[8,128], index: 6, kind: output, shape index: {}]  }
   0x1   :  { %200 = vmatprep.subr.bf16.mxu1 %v223_v0  ;;  %v218_v1 = vld [vmem:[%s294_s1] sm:$0xff]   ;;  %194 = vmatprep.subr.bf16.mxu0 %v223_v0  ;;  %v219_v2 = vld [vmem:[%s294_s1 + $0x8] sm:$0xff]   ;;  %v220_v7 = vld [vmem:[%s294_s1 + $0x10] sm:$0xff]   ;;  %vm36_vm2 = vcmask 31744   ;;  %vm121_vm3 = vcmask 1043456   ;;  %vm117_vm4 = vcmask 588800  }
   0x2   :  { %196 = vmatprep.mubr.msk.bf16.mxu0 %vm224_vm1, %v223_v0  ;;  %210 = vmatprep.mubr.msk.bf16.mxu1 %vm224_vm1, %v223_v0  ;;  %v35_v4 = vld [vmem:[%s295_s4] sm:$0x3]  ;;  %v221_v10 = vld [vmem:[%s294_s1 + $0x18] sm:$0xff]  }
   0x3   :  { %201 = vmatpush3.bf16.msra.mxu1 %v218_v1  ;;  %217 = vset.pattern.permute.xlu0 %v225_v3  ;;  %v42_v5 = vsel %vm40_vm0, %v35_v4, 0  ;;  %v84_v6 = vld [vmem:[%s296_s2] sm:$0xff] }
   0x4   :  { %202 = vmatprep.subr.bf16.mxu1 %v223_v0  ;;  %195 = vmatpush3.bf16.msra.mxu0 %v42_v5  ;;  %v34_v8 = vld [vmem:[%s297_s3] sm:$0xf] }
   0x5   :  { %87 = vperm.xlu0 %217, %v84_v6   ;;  %v166_v9 = vld [vmem:[%s298_s5] sm:$0xff] }
   0x6   :  { %v222_v11 = vld [vmem:[%s294_s1 + $0x20] ss:$0 sps:$4 sm:$0xff]  }
   0x7   :  { %203 = vmatpush3.bf16.msra.mxu1 %v219_v2  ;;  %197 = vmatmul.mubr.msk.bf16.vlgmr.msra.gmra.mrb[0].mxu0 %vm36_vm2, %v34_v8  ;;  %v123_v12 = vsel %vm121_vm3, %v222_v11, 0  ;;  %v24_v13 = vld [vmem:[%s299_s0] sm:$0xf] }
   0x8   :  { %204 = vmatprep.subr.bf16.mxu1 %v223_v0 }
   0x9   :  { %169 = vperm.xlu0 %217, %v166_v9  }
   0xb   :  { %205 = vmatpush3.bf16.msra.mxu1 %v220_v7 }
   0xc   :  { %206 = vmatprep.subr.bf16.mxu1 %v223_v0 }
   0xf   :  { %207 = vmatpush3.bf16.msra.mxu1 %v221_v10 }
  0x10   :  { %208 = vmatprep.subr.bf16.mxu1 %v223_v0 }
  0x13   :  { %209 = vmatpush3.bf16.msra.mxu1 %v123_v12 }
  0x16   :  { %211 = vmatmul.mubr.msk.bf16.vlgmr.msra.gmra.mrb[0].mxu1 %vm117_vm4, %v24_v13 }
  0x84   :  { %v88_v18 = vpop.permute.xlu0 %87 }
  0x88   :  { %v170_v25 = vpop.permute.xlu0 %169 }
  0xda   :  { %v78_v14 = vpop.f32.mrb[0].mxu0 }
  0xdb   :  { %v198_v15 = vpop.f32.mrb[1].mxu0 }
  0xdc   :  { %v81_v16 = vpop.f32.mrb[2].mxu0 }
  0xdd   :  { %v199_v17 = vpop.f32.mrb[3].mxu0 }
  0xe9   :  { %v159_v19 = vpop.f32.mrb[0].mxu1 }
  0xea   :  { %v160_v20 = vadd.f32 %v159_v19, %v88_v18  ;;  %v212_v21 = vpop.f32.mrb[1].mxu1 }
  0xeb   :  { %v162_v22 = vpop.f32.mrb[2].mxu1 }
  0xec   :  { %v165_v23 = vadd.f32 %v160_v20, %v78_v14  ;;  %v213_v24 = vpop.f32.mrb[3].mxu1 }
  0xee   :  { %v172_v26 = vadd.f32 %v170_v25, %v165_v23 }
  0xf0   :  { %v173_v27 = vmax.f32 %v172_v26, 0.0 }
  0xf2   :  { %174 = vst [vmem:[%s300_s6] sm:$0xff] %v173_v27 }

</bundles_post_ra>
